<compile_context>
chip_gen: v7x
topology: tpu7x:2x2x1
jax: 0.10.0
libtpu: 0.0.40
codegen_flags: <defaults>
</compile_context>

<pallas_src>
import functools

import jax
import jax.numpy as jnp
from jax.experimental import pallas as pl
from jax.experimental.pallas import tpu as pltpu


_VPU_CONTRACTION_MAX = 32   # contractions this small skip the MXU (unrolled VPU FMA)
_MAX_PIXEL_TILE = 2048      # 512-1024 lane tiles already reach ~85-86% of HBM roofline


def _round_up(x, m):
    return ((x + m - 1) // m) * m


def _vmem_budget():
    """Returns (byte budget for tiling decisions, vmem_limit_bytes for Mosaic)."""
    try:
        cap = int(getattr(pltpu.get_tpu_info(), "vmem_capacity_bytes", 0)) or (64 << 20)
    except Exception:
        cap = 64 << 20                       # worst case: v7x per-TC physical VMEM
    limit = min(cap * 3 // 4, 100 << 20)     # ~48 MiB on v7x, ~96 MiB on v5e/v6e
    return (limit * 4) // 5, limit           # leave headroom for compiler scratch


def _vmem_usage(cin, cout, ck, tp, kt, x_bytes, w_bytes, out_bytes):
    """Rough per-step VMEM footprint (pipeline buffers + scratch), in bytes."""
    su = lambda r: _round_up(max(int(r), 1), 8)       # sublane padding
    la = lambda c: _round_up(max(int(c), 1), 128)     # lane padding
    wmult = 1 if kt == 1 else 2     # params are single-buffered when grid-invariant
    use = 2 * su(cin) * la(tp) * x_bytes              # x tile (double buffered)
    use += 2 * su(cout) * la(tp) * out_bytes          # out tile (double buffered)
    use += wmult * su(ck) * la(cin) * w_bytes         # W1 chunk
    use += wmult * su(ck) * 128 * w_bytes             # b1 chunk
    use += wmult * su(cout) * la(ck) * w_bytes        # W2 chunk
    use += su(cout) * 128 * w_bytes                   # b2
    use += su(cout) * la(tp) * 4                      # f32 accumulator scratch
    use += 3 * su(ck) * la(tp) * 4                    # h + GELU temporaries (slack)
    return use


def _pixel_tile_candidates(hw):
    """Pixel-tile sizes, best first: whole image (no padding), then 128-multiples
    that divide round_up(hw, 128) (minimal padding when the image is split)."""
    cands = []
    if hw <= _MAX_PIXEL_TILE:
        cands.append(hw)
    n128 = _round_up(hw, 128) // 128
    for d in range(n128, 0, -1):
        if n128 % d:
            continue
        t = d * 128
        if t <= _MAX_PIXEL_TILE and t not in cands:
            cands.append(t)
    return cands


def _select_tiling(cin, chid, cout, hw, x_bytes, w_bytes, out_bytes, budget):
    """Pick (pixel_tile, chid_chunk): prefer the whole image per step with the
    full hidden width; shrink the pixel tile / chunk Chid only when the
    generation-specific VMEM budget forces it."""
    tp_cands = _pixel_tile_candidates(hw)

    # 1) full Chid resident, biggest pixel tile that fits.
    for tp in tp_cands:
        if _vmem_usage(cin, cout, chid, tp, 1, x_bytes, w_bytes, out_bytes) <= budget:
            return tp, chid

    # 2) chunk Chid (reduction grid axis) while keeping the pixel tile lane-dense.
    ck_cands = []
    c = min(2048, _round_up(chid, 128))
    while c >= 128:
        if c < chid:
            ck_cands.append(c)
        c //= 2
    for tp in tp_cands:
        if tp > 1024:           # wide Chid: cap the pixel tile (v7x VMEM guidance)
            continue
        for ck in ck_cands:
            kt = _round_up(chid, ck) // ck
            if _vmem_usage(cin, cout, ck, tp, kt, x_bytes, w_bytes, out_bytes) <= budget:
                return tp, ck

    return 128, 128             # last resort for extreme channel counts


def _make_cmlp_kernel(vpu_fc1, vpu_fc2, approx_gelu):
    def kernel(x_ref, w1t_ref, b1_ref, w2t_ref, b2_ref, o_ref, acc_ref):
        k = pl.program_id(2)

        @pl.when(k == 0)
        def _():
            acc_ref[...] = jnp.zeros_like(acc_ref)

        x = x_ref[0]                                   # (Cin, TP)
        cin, tp = x.shape
        ck = w1t_ref.shape[0]                          # current Chid chunk

        # ---- fc1: h = W1[chunk] @ x + b1[chunk] -----------------------------
        if vpu_fc1:
            # Tiny contraction (K = Cin): unrolled f32 VPU broadcast-FMA beats a
            # ~3%-utilized MXU push.
            w1 = w1t_ref[...].astype(jnp.float32)      # (ck, Cin)
            xf = x.astype(jnp.float32)
            h = jnp.broadcast_to(b1_ref[...].astype(jnp.float32), (ck, tp))
            for c in range(cin):
                h = h + w1[:, c:c + 1] * xf[c:c + 1, :]
        else:
            # bf16 operands (MXU-native on v5e/v6e/v7x), f32 accumulation.
            h = jnp.dot(w1t_ref[...].astype(jnp.bfloat16),
                        x.astype(jnp.bfloat16),
                        preferred_element_type=jnp.float32)
            h = h + b1_ref[...].astype(jnp.float32)

        # ---- activation ------------------------------------------------------
        # approximate=True (tanh) runs on the EUP slot; exact erf (PyTorch
        # nn.GELU default) is available via approximate_gelu=False.
        h = jax.nn.gelu(h, approximate=approx_gelu)

        # ---- fc2: acc += W2[:, chunk] @ h -------------------------------------
        if vpu_fc2:
            w2 = w2t_ref[...].astype(jnp.float32)      # (Cout, ck)
            acc = acc_ref[...]
            for j in range(ck):
                acc = acc + w2[:, j:j + 1] * h[j:j + 1, :]
            acc_ref[...] = acc
        else:
            acc_ref[...] += jnp.dot(w2t_ref[...].astype(jnp.bfloat16),
                                    h.astype(jnp.bfloat16),
                                    preferred_element_type=jnp.float32)

        # ---- epilogue: bias + store on the last Chid chunk --------------------
        @pl.when(k == pl.num_programs(2) - 1)
        def _():
            o_ref[0] = (acc_ref[...] + b2_ref[...].astype(jnp.float32)
                        ).astype(o_ref.dtype)

    return kernel


def _param_spec(block_shape, index_map, single_buffer):
    # Grid-invariant parameters are DMA'd once; Buffered(1) halves their VMEM.
    if single_buffer:
        return pl.BlockSpec(block_shape, index_map, pipeline_mode=pl.Buffered(1))
    return pl.BlockSpec(block_shape, index_map)


@functools.partial(jax.jit, static_argnames=("approximate_gelu",))
def cmlp_forward(x_nchw, w1, b1, w2, b2, approximate_gelu=True):
    """CMlp forward: per-pixel y = W2^T gelu(W1^T x + b1) + b2.

    x_nchw: (N, Cin, H, W); w1: (Cin, Chid); b1: (Chid,); w2: (Chid, Cout);
    b2: (Cout,).  Returns (N, Cout, H, W).  Dropout(p=0.0) is the identity.
    """
    n, cin, h_dim, w_dim = x_nchw.shape
    chid = w1.shape[1]
    cout = w2.shape[1]
    hw = h_dim * w_dim

    x_bytes = jnp.dtype(x_nchw.dtype).itemsize
    w_bytes = jnp.dtype(w1.dtype).itemsize
    budget, vmem_limit = _vmem_budget()
    tp, ck = _select_tiling(cin, chid, cout, hw, x_bytes, w_bytes, x_bytes, budget)

    # Pixel padding only when a ragged image must be split into several lane
    # tiles (whole-image tiles need no padding at all -> demo path pads nothing).
    hw_pad = hw if tp >= hw else _round_up(hw, tp)
    tp = min(tp, hw_pad)
    pt = hw_pad // tp

    # Hidden-channel padding only when Chid is chunked raggedly.  Zero padding
    # is exact: gelu(0) = 0 and zero W2 columns contribute nothing.
    chid_pad = chid if ck >= chid else _round_up(chid, ck)
    ck = min(ck, chid_pad)
    kt = chid_pad // ck

    # Channels-first, pixels-last: a pure reshape of NCHW (no transpose); the
    # pixel axis lands on lanes so stores are lane-dense and unmasked.
    x3d = x_nchw.reshape(n, cin, hw)
    if hw_pad != hw:
        # TODO(synk): replace this extra HBM pad/slice pass with an in-kernel
        # masked store for the ragged tail tile.
        x3d = jnp.pad(x3d, ((0, 0), (0, 0), (0, hw_pad - hw)))

    # Tiny parameter transposes / pads (negligible next to the activations).
    w1t = jnp.transpose(w1)                    # (Chid, Cin)
    w2t = jnp.transpose(w2)                    # (Cout, Chid)
    b1c = b1.reshape(chid, 1)
    b2c = b2.reshape(cout, 1)
    if chid_pad != chid:
        w1t = jnp.pad(w1t, ((0, chid_pad - chid), (0, 0)))
        b1c = jnp.pad(b1c, ((0, chid_pad - chid), (0, 0)))
        w2t = jnp.pad(w2t, ((0, 0), (0, chid_pad - chid)))

    vpu_fc1 = cin <= _VPU_CONTRACTION_MAX
    vpu_fc2 = ck <= _VPU_CONTRACTION_MAX
    kernel = _make_cmlp_kernel(vpu_fc1, vpu_fc2, approximate_gelu)

    resident = kt == 1    # weight chunks never change across the grid

    m = n * hw
    cost = pl.CostEstimate(
        flops=2 * m * (cin * chid + chid * cout),
        transcendentals=m * chid,
        bytes_accessed=(m * (cin + cout) * x_bytes
                        + (cin * chid + chid * cout + chid + cout) * w_bytes),
    )

    out3d = pl.pallas_call(
        kernel,
        out_shape=jax.ShapeDtypeStruct((n, cout, hw_pad), x_nchw.dtype),
        grid_spec=pltpu.PrefetchScalarGridSpec(
            num_scalar_prefetch=0,
            grid=(n, pt, kt),
            in_specs=[
                # Activation slab for one (image, pixel-tile); its block index is
                # constant across k, so Pallas does not re-copy it per Chid chunk.
                pl.BlockSpec((1, cin, tp), lambda ni, pi, ki: (ni, 0, pi)),
                _param_spec((ck, cin), lambda ni, pi, ki: (ki, 0), resident),
                _param_spec((ck, 1), lambda ni, pi, ki: (ki, 0), resident),
                _param_spec((cout, ck), lambda ni, pi, ki: (0, ki), resident),
                _param_spec((cout, 1), lambda ni, pi, ki: (0, 0), True),
            ],
            out_specs=pl.BlockSpec((1, cout, tp), lambda ni, pi, ki: (ni, 0, pi)),
            scratch_shapes=[pltpu.VMEM((cout, tp), jnp.float32)],
        ),
        compiler_params=pltpu.CompilerParams(
            # image / pixel-tile axes are independent (megacore split on v7x);
            # the Chid axis is the reduction into the accumulator scratch.
            dimension_semantics=("parallel", "parallel", "arbitrary"),
            vmem_limit_bytes=vmem_limit,
        ),
        cost_estimate=cost,
    )(x3d, w1t, b1c, w2t, b2c)

    if hw_pad != hw:
        out3d = out3d[:, :, :hw]
    return out3d.reshape(n, cout, h_dim, w_dim)


def _reference(x_nchw, w1, b1, w2, b2):
    # Exact f32 reference (HIGHEST-precision einsums, exact erf GELU).
    hp = jax.lax.Precision.HIGHEST
    x = jnp.transpose(x_nchw, (0, 2, 3, 1)).astype(jnp.float32)
    h = jnp.einsum("nhwc,cd->nhwd", x, w1.astype(jnp.float32), precision=hp) + b1
    h = jax.nn.gelu(h, approximate=False)
    y = jnp.einsum("nhwd,de->nhwe", h, w2.astype(jnp.float32), precision=hp) + b2
    return jnp.transpose(y, (0, 3, 1, 2)).astype(x_nchw.dtype)


if __name__ == "__main__":
    # Module config: in_features=4, hidden_features=32, out_features=4.
    N, Cin, H, W = 2, 4, 16, 16
    Chid, Cout = 32, 4

    key = jax.random.PRNGKey(0)
    kx, kw1, kb1, kw2, kb2 = jax.random.split(key, 5)

    x = jax.random.normal(kx, (N, Cin, H, W), dtype=jnp.float32)

    # Conv2d 1x1 weights in matmul form: (Cin, Chid) / (Chid, Cout); biases 1-D.
    w1 = jax.random.normal(kw1, (Cin, Chid), dtype=jnp.float32) * (1.0 / Cin) ** 0.5
    b1 = jax.random.normal(kb1, (Chid,), dtype=jnp.float32) * 0.1
    w2 = jax.random.normal(kw2, (Chid, Cout), dtype=jnp.float32) * (1.0 / Chid) ** 0.5
    b2 = jax.random.normal(kb2, (Cout,), dtype=jnp.float32) * 0.1

    out = jax.block_until_ready(cmlp_forward(x, w1, b1, w2, b2))
    ref = _reference(x, w1, b1, w2, b2)

    assert out.shape == (N, Cout, H, W)
    # Kernel uses tanh-GELU (per perf review) vs. the exact-erf f32 reference;
    # compare with a relative-L2 criterion (observed error ~1e-3 or better).
    num = jnp.linalg.norm((out - ref).astype(jnp.float32))
    den = jnp.linalg.norm(ref.astype(jnp.float32))
    rel_err = float(num / den)
    assert rel_err < 1e-2, f"relative L2 error too large: {rel_err}"

    print("KERNEL_OK")
</pallas_src>

<mosaic_0001>
module attributes {stable_mosaic.version = 11 : i64} {
  func.func @kernel(%arg0: i32, %arg1: i32, %arg2: i32, %arg3: memref<1x4x256xf32, #tpu.memory_space<vmem>>, %arg4: memref<32x4xf32, #tpu.memory_space<vmem>>, %arg5: memref<32x1xf32, #tpu.memory_space<vmem>>, %arg6: memref<4x32xf32, #tpu.memory_space<vmem>>, %arg7: memref<4x1xf32, #tpu.memory_space<vmem>>, %arg8: memref<1x4x256xf32, #tpu.memory_space<vmem>>, %arg9: memref<4x256xf32, #tpu.memory_space<vmem>>) attributes {dimension_semantics = [#tpu.dimension_semantics<parallel>, #tpu.dimension_semantics<parallel>, #tpu.dimension_semantics<arbitrary>], iteration_bounds = array<i64: 2, 1, 1>, scalar_prefetch = 0 : i64, scratch_operands = 1 : i64, tpu.core_type = #tpu.core_type<tc>, window_params = [{transform_indices = @transform_0, window_bounds = array<i64: 1, 4, 256>}, {pipeline_mode = #tpu.pipeline_mode<synchronous>, transform_indices = @transform_1, window_bounds = array<i64: 32, 4>}, {pipeline_mode = #tpu.pipeline_mode<synchronous>, transform_indices = @transform_2, window_bounds = array<i64: 32, 1>}, {pipeline_mode = #tpu.pipeline_mode<synchronous>, transform_indices = @transform_3, window_bounds = array<i64: 4, 32>}, {pipeline_mode = #tpu.pipeline_mode<synchronous>, transform_indices = @transform_4, window_bounds = array<i64: 4, 1>}, {transform_indices = @transform_5, window_bounds = array<i64: 1, 4, 256>}]} {
    %c0_i32 = arith.constant 0 : i32
    %0 = arith.cmpi eq, %arg2, %c0_i32 : i32
    %1 = arith.extui %0 : i1 to i32
    %c0_i32_0 = arith.constant 0 : i32
    %2 = arith.cmpi ne, %1, %c0_i32_0 : i32
    scf.if %2 {
      %cst_18 = arith.constant 0.000000e+00 : f32
      %244 = vector.broadcast %cst_18 : f32 to vector<4x256xf32>
      %c0_19 = arith.constant 0 : index
      %c0_20 = arith.constant 0 : index
      %245 = vector.load %arg9[%c0_19, %c0_20] : memref<4x256xf32, #tpu.memory_space<vmem>>, vector<4x256xf32>
      tpu.vector_store %arg9[%c0_19, %c0_20], %244 {strides = array<i32>} : memref<4x256xf32, #tpu.memory_space<vmem>>, vector<4x256xf32>,
    } else {
    }
    %c0 = arith.constant 0 : index
    %c0_1 = arith.constant 0 : index
    %c0_2 = arith.constant 0 : index
    %3 = vector.load %arg3[%c0, %c0_1, %c0_2] : memref<1x4x256xf32, #tpu.memory_space<vmem>>, vector<1x4x256xf32>
    %4 = vector.shape_cast %3 : vector<1x4x256xf32> to vector<4x256xf32>
    %c0_3 = arith.constant 0 : index
    %c0_4 = arith.constant 0 : index
    %5 = vector.load %arg4[%c0_3, %c0_4] : memref<32x4xf32, #tpu.memory_space<vmem>>, vector<32x4xf32>
    %c0_5 = arith.constant 0 : index
    %c0_6 = arith.constant 0 : index
    %6 = vector.load %arg5[%c0_5, %c0_6] : memref<32x1xf32, #tpu.memory_space<vmem>>, vector<32x1xf32>
    %7 = vector.shape_cast %6 : vector<32x1xf32> to vector<32x1xf32>
    %8 = vector.broadcast %7 : vector<32x1xf32> to vector<32x256xf32>
    %9 = vector.extract_strided_slice %5 {offsets = [0, 0], sizes = [32, 1], strides = [1, 1]} : vector<32x4xf32> to vector<32x1xf32>
    %10 = vector.extract_strided_slice %4 {offsets = [0, 0], sizes = [1, 256], strides = [1, 1]} : vector<4x256xf32> to vector<1x256xf32>
    %11 = vector.broadcast %9 : vector<32x1xf32> to vector<32x256xf32>
    %12 = vector.broadcast %10 : vector<1x256xf32> to vector<32x256xf32>
    %13 = arith.mulf %11, %12 : vector<32x256xf32>
    %14 = arith.addf %8, %13 : vector<32x256xf32>
    %15 = vector.extract_strided_slice %5 {offsets = [0, 1], sizes = [32, 1], strides = [1, 1]} : vector<32x4xf32> to vector<32x1xf32>
    %16 = vector.extract_strided_slice %4 {offsets = [1, 0], sizes = [1, 256], strides = [1, 1]} : vector<4x256xf32> to vector<1x256xf32>
    %17 = vector.broadcast %15 : vector<32x1xf32> to vector<32x256xf32>
    %18 = vector.broadcast %16 : vector<1x256xf32> to vector<32x256xf32>
    %19 = arith.mulf %17, %18 : vector<32x256xf32>
    %20 = arith.addf %14, %19 : vector<32x256xf32>
    %21 = vector.extract_strided_slice %5 {offsets = [0, 2], sizes = [32, 1], strides = [1, 1]} : vector<32x4xf32> to vector<32x1xf32>
    %22 = vector.extract_strided_slice %4 {offsets = [2, 0], sizes = [1, 256], strides = [1, 1]} : vector<4x256xf32> to vector<1x256xf32>
    %23 = vector.broadcast %21 : vector<32x1xf32> to vector<32x256xf32>
    %24 = vector.broadcast %22 : vector<1x256xf32> to vector<32x256xf32>
    %25 = arith.mulf %23, %24 : vector<32x256xf32>
    %26 = arith.addf %20, %25 : vector<32x256xf32>
    %27 = vector.extract_strided_slice %5 {offsets = [0, 3], sizes = [32, 1], strides = [1, 1]} : vector<32x4xf32> to vector<32x1xf32>
    %28 = vector.extract_strided_slice %4 {offsets = [3, 0], sizes = [1, 256], strides = [1, 1]} : vector<4x256xf32> to vector<1x256xf32>
    %29 = vector.broadcast %27 : vector<32x1xf32> to vector<32x256xf32>
    %30 = vector.broadcast %28 : vector<1x256xf32> to vector<32x256xf32>
    %31 = arith.mulf %29, %30 : vector<32x256xf32>
    %32 = arith.addf %26, %31 : vector<32x256xf32>
    %33 = arith.mulf %32, %32 : vector<32x256xf32>
    %34 = arith.mulf %32, %33 : vector<32x256xf32>
    %cst = arith.constant 4.471500e-02 : f32
    %35 = vector.broadcast %cst : f32 to vector<32x256xf32>
    %36 = arith.mulf %35, %34 : vector<32x256xf32>
    %37 = arith.addf %32, %36 : vector<32x256xf32>
    %cst_7 = arith.constant 0.797884583 : f32
    %38 = vector.broadcast %cst_7 : f32 to vector<32x256xf32>
    %39 = arith.mulf %38, %37 : vector<32x256xf32>
    %40 = math.tanh %39 : vector<32x256xf32>
    %cst_8 = arith.constant 1.000000e+00 : f32
    %41 = vector.broadcast %cst_8 : f32 to vector<32x256xf32>
    %42 = arith.addf %41, %40 : vector<32x256xf32>
    %cst_9 = arith.constant 5.000000e-01 : f32
    %43 = vector.broadcast %cst_9 : f32 to vector<32x256xf32>
    %44 = arith.mulf %43, %42 : vector<32x256xf32>
    %45 = arith.mulf %32, %44 : vector<32x256xf32>
    %c0_10 = arith.constant 0 : index
    %c0_11 = arith.constant 0 : index
    %46 = vector.load %arg6[%c0_10, %c0_11] : memref<4x32xf32, #tpu.memory_space<vmem>>, vector<4x32xf32>
    %c0_12 = arith.constant 0 : index
    %c0_13 = arith.constant 0 : index
    %47 = vector.load %arg9[%c0_12, %c0_13] : memref<4x256xf32, #tpu.memory_space<vmem>>, vector<4x256xf32>
    %48 = vector.extract_strided_slice %46 {offsets = [0, 0], sizes = [4, 1], strides = [1, 1]} : vector<4x32xf32> to vector<4x1xf32>
    %49 = vector.extract_strided_slice %45 {offsets = [0, 0], sizes = [1, 256], strides = [1, 1]} : vector<32x256xf32> to vector<1x256xf32>
    %50 = vector.broadcast %48 : vector<4x1xf32> to vector<4x256xf32>
    %51 = vector.broadcast %49 : vector<1x256xf32> to vector<4x256xf32>
    %52 = arith.mulf %50, %51 : vector<4x256xf32>
    %53 = arith.addf %47, %52 : vector<4x256xf32>
    %54 = vector.extract_strided_slice %46 {offsets = [0, 1], sizes = [4, 1], strides = [1, 1]} : vector<4x32xf32> to vector<4x1xf32>
    %55 = vector.extract_strided_slice %45 {offsets = [1, 0], sizes = [1, 256], strides = [1, 1]} : vector<32x256xf32> to vector<1x256xf32>
    %56 = vector.broadcast %54 : vector<4x1xf32> to vector<4x256xf32>
    %57 = vector.broadcast %55 : vector<1x256xf32> to vector<4x256xf32>
    %58 = arith.mulf %56, %57 : vector<4x256xf32>
    %59 = arith.addf %53, %58 : vector<4x256xf32>
    %60 = vector.extract_strided_slice %46 {offsets = [0, 2], sizes = [4, 1], strides = [1, 1]} : vector<4x32xf32> to vector<4x1xf32>
    %61 = vector.extract_strided_slice %45 {offsets = [2, 0], sizes = [1, 256], strides = [1, 1]} : vector<32x256xf32> to vector<1x256xf32>
    %62 = vector.broadcast %60 : vector<4x1xf32> to vector<4x256xf32>
    %63 = vector.broadcast %61 : vector<1x256xf32> to vector<4x256xf32>
    %64 = arith.mulf %62, %63 : vector<4x256xf32>
    %65 = arith.addf %59, %64 : vector<4x256xf32>
    %66 = vector.extract_strided_slice %46 {offsets = [0, 3], sizes = [4, 1], strides = [1, 1]} : vector<4x32xf32> to vector<4x1xf32>
    %67 = vector.extract_strided_slice %45 {offsets = [3, 0], sizes = [1, 256], strides = [1, 1]} : vector<32x256xf32> to vector<1x256xf32>
    %68 = vector.broadcast %66 : vector<4x1xf32> to vector<4x256xf32>
    %69 = vector.broadcast %67 : vector<1x256xf32> to vector<4x256xf32>
    %70 = arith.mulf %68, %69 : vector<4x256xf32>
    %71 = arith.addf %65, %70 : vector<4x256xf32>
    %72 = vector.extract_strided_slice %46 {offsets = [0, 4], sizes = [4, 1], strides = [1, 1]} : vector<4x32xf32> to vector<4x1xf32>
    %73 = vector.extract_strided_slice %45 {offsets = [4, 0], sizes = [1, 256], strides = [1, 1]} : vector<32x256xf32> to vector<1x256xf32>
    %74 = vector.broadcast %72 : vector<4x1xf32> to vector<4x256xf32>
    %75 = vector.broadcast %73 : vector<1x256xf32> to vector<4x256xf32>
    %76 = arith.mulf %74, %75 : vector<4x256xf32>
    %77 = arith.addf %71, %76 : vector<4x256xf32>
    %78 = vector.extract_strided_slice %46 {offsets = [0, 5], sizes = [4, 1], strides = [1, 1]} : vector<4x32xf32> to vector<4x1xf32>
    %79 = vector.extract_strided_slice %45 {offsets = [5, 0], sizes = [1, 256], strides = [1, 1]} : vector<32x256xf32> to vector<1x256xf32>
    %80 = vector.broadcast %78 : vector<4x1xf32> to vector<4x256xf32>
    %81 = vector.broadcast %79 : vector<1x256xf32> to vector<4x256xf32>
    %82 = arith.mulf %80, %81 : vector<4x256xf32>
    %83 = arith.addf %77, %82 : vector<4x256xf32>
    %84 = vector.extract_strided_slice %46 {offsets = [0, 6], sizes = [4, 1], strides = [1, 1]} : vector<4x32xf32> to vector<4x1xf32>
    %85 = vector.extract_strided_slice %45 {offsets = [6, 0], sizes = [1, 256], strides = [1, 1]} : vector<32x256xf32> to vector<1x256xf32>
    %86 = vector.broadcast %84 : vector<4x1xf32> to vector<4x256xf32>
    %87 = vector.broadcast %85 : vector<1x256xf32> to vector<4x256xf32>
    %88 = arith.mulf %86, %87 : vector<4x256xf32>
    %89 = arith.addf %83, %88 : vector<4x256xf32>
    %90 = vector.extract_strided_slice %46 {offsets = [0, 7], sizes = [4, 1], strides = [1, 1]} : vector<4x32xf32> to vector<4x1xf32>
    %91 = vector.extract_strided_slice %45 {offsets = [7, 0], sizes = [1, 256], strides = [1, 1]} : vector<32x256xf32> to vector<1x256xf32>
    %92 = vector.broadcast %90 : vector<4x1xf32> to vector<4x256xf32>
    %93 = vector.broadcast %91 : vector<1x256xf32> to vector<4x256xf32>
    %94 = arith.mulf %92, %93 : vector<4x256xf32>
    %95 = arith.addf %89, %94 : vector<4x256xf32>
    %96 = vector.extract_strided_slice %46 {offsets = [0, 8], sizes = [4, 1], strides = [1, 1]} : vector<4x32xf32> to vector<4x1xf32>
    %97 = vector.extract_strided_slice %45 {offsets = [8, 0], sizes = [1, 256], strides = [1, 1]} : vector<32x256xf32> to vector<1x256xf32>
    %98 = vector.broadcast %96 : vector<4x1xf32> to vector<4x256xf32>
    %99 = vector.broadcast %97 : vector<1x256xf32> to vector<4x256xf32>
    %100 = arith.mulf %98, %99 : vector<4x256xf32>
    %101 = arith.addf %95, %100 : vector<4x256xf32>
    %102 = vector.extract_strided_slice %46 {offsets = [0, 9], sizes = [4, 1], strides = [1, 1]} : vector<4x32xf32> to vector<4x1xf32>
    %103 = vector.extract_strided_slice %45 {offsets = [9, 0], sizes = [1, 256], strides = [1, 1]} : vector<32x256xf32> to vector<1x256xf32>
    %104 = vector.broadcast %102 : vector<4x1xf32> to vector<4x256xf32>
    %105 = vector.broadcast %103 : vector<1x256xf32> to vector<4x256xf32>
    %106 = arith.mulf %104, %105 : vector<4x256xf32>
    %107 = arith.addf %101, %106 : vector<4x256xf32>
    %108 = vector.extract_strided_slice %46 {offsets = [0, 10], sizes = [4, 1], strides = [1, 1]} : vector<4x32xf32> to vector<4x1xf32>
    %109 = vector.extract_strided_slice %45 {offsets = [10, 0], sizes = [1, 256], strides = [1, 1]} : vector<32x256xf32> to vector<1x256xf32>
    %110 = vector.broadcast %108 : vector<4x1xf32> to vector<4x256xf32>
    %111 = vector.broadcast %109 : vector<1x256xf32> to vector<4x256xf32>
    %112 = arith.mulf %110, %111 : vector<4x256xf32>
    %113 = arith.addf %107, %112 : vector<4x256xf32>
    %114 = vector.extract_strided_slice %46 {offsets = [0, 11], sizes = [4, 1], strides = [1, 1]} : vector<4x32xf32> to vector<4x1xf32>
    %115 = vector.extract_strided_slice %45 {offsets = [11, 0], sizes = [1, 256], strides = [1, 1]} : vector<32x256xf32> to vector<1x256xf32>
    %116 = vector.broadcast %114 : vector<4x1xf32> to vector<4x256xf32>
    %117 = vector.broadcast %115 : vector<1x256xf32> to vector<4x256xf32>
    %118 = arith.mulf %116, %117 : vector<4x256xf32>
    %119 = arith.addf %113, %118 : vector<4x256xf32>
    %120 = vector.extract_strided_slice %46 {offsets = [0, 12], sizes = [4, 1], strides = [1, 1]} : vector<4x32xf32> to vector<4x1xf32>
    %121 = vector.extract_strided_slice %45 {offsets = [12, 0], sizes = [1, 256], strides = [1, 1]} : vector<32x256xf32> to vector<1x256xf32>
    %122 = vector.broadcast %120 : vector<4x1xf32> to vector<4x256xf32>
    %123 = vector.broadcast %121 : vector<1x256xf32> to vector<4x256xf32>
    %124 = arith.mulf %122, %123 : vector<4x256xf32>
    %125 = arith.addf %119, %124 : vector<4x256xf32>
    %126 = vector.extract_strided_slice %46 {offsets = [0, 13], sizes = [4, 1], strides = [1, 1]} : vector<4x32xf32> to vector<4x1xf32>
    %127 = vector.extract_strided_slice %45 {offsets = [13, 0], sizes = [1, 256], strides = [1, 1]} : vector<32x256xf32> to vector<1x256xf32>
    %128 = vector.broadcast %126 : vector<4x1xf32> to vector<4x256xf32>
    %129 = vector.broadcast %127 : vector<1x256xf32> to vector<4x256xf32>
    %130 = arith.mulf %128, %129 : vector<4x256xf32>
    %131 = arith.addf %125, %130 : vector<4x256xf32>
    %132 = vector.extract_strided_slice %46 {offsets = [0, 14], sizes = [4, 1], strides = [1, 1]} : vector<4x32xf32> to vector<4x1xf32>
    %133 = vector.extract_strided_slice %45 {offsets = [14, 0], sizes = [1, 256], strides = [1, 1]} : vector<32x256xf32> to vector<1x256xf32>
    %134 = vector.broadcast %132 : vector<4x1xf32> to vector<4x256xf32>
    %135 = vector.broadcast %133 : vector<1x256xf32> to vector<4x256xf32>
    %136 = arith.mulf %134, %135 : vector<4x256xf32>
    %137 = arith.addf %131, %136 : vector<4x256xf32>
    %138 = vector.extract_strided_slice %46 {offsets = [0, 15], sizes = [4, 1], strides = [1, 1]} : vector<4x32xf32> to vector<4x1xf32>
    %139 = vector.extract_strided_slice %45 {offsets = [15, 0], sizes = [1, 256], strides = [1, 1]} : vector<32x256xf32> to vector<1x256xf32>
    %140 = vector.broadcast %138 : vector<4x1xf32> to vector<4x256xf32>
    %141 = vector.broadcast %139 : vector<1x256xf32> to vector<4x256xf32>
    %142 = arith.mulf %140, %141 : vector<4x256xf32>
    %143 = arith.addf %137, %142 : vector<4x256xf32>
    %144 = vector.extract_strided_slice %46 {offsets = [0, 16], sizes = [4, 1], strides = [1, 1]} : vector<4x32xf32> to vector<4x1xf32>
    %145 = vector.extract_strided_slice %45 {offsets = [16, 0], sizes = [1, 256], strides = [1, 1]} : vector<32x256xf32> to vector<1x256xf32>
    %146 = vector.broadcast %144 : vector<4x1xf32> to vector<4x256xf32>
    %147 = vector.broadcast %145 : vector<1x256xf32> to vector<4x256xf32>
    %148 = arith.mulf %146, %147 : vector<4x256xf32>
    %149 = arith.addf %143, %148 : vector<4x256xf32>
    %150 = vector.extract_strided_slice %46 {offsets = [0, 17], sizes = [4, 1], strides = [1, 1]} : vector<4x32xf32> to vector<4x1xf32>
    %151 = vector.extract_strided_slice %45 {offsets = [17, 0], sizes = [1, 256], strides = [1, 1]} : vector<32x256xf32> to vector<1x256xf32>
    %152 = vector.broadcast %150 : vector<4x1xf32> to vector<4x256xf32>
    %153 = vector.broadcast %151 : vector<1x256xf32> to vector<4x256xf32>
    %154 = arith.mulf %152, %153 : vector<4x256xf32>
    %155 = arith.addf %149, %154 : vector<4x256xf32>
    %156 = vector.extract_strided_slice %46 {offsets = [0, 18], sizes = [4, 1], strides = [1, 1]} : vector<4x32xf32> to vector<4x1xf32>
    %157 = vector.extract_strided_slice %45 {offsets = [18, 0], sizes = [1, 256], strides = [1, 1]} : vector<32x256xf32> to vector<1x256xf32>
    %158 = vector.broadcast %156 : vector<4x1xf32> to vector<4x256xf32>
    %159 = vector.broadcast %157 : vector<1x256xf32> to vector<4x256xf32>
    %160 = arith.mulf %158, %159 : vector<4x256xf32>
    %161 = arith.addf %155, %160 : vector<4x256xf32>
    %162 = vector.extract_strided_slice %46 {offsets = [0, 19], sizes = [4, 1], strides = [1, 1]} : vector<4x32xf32> to vector<4x1xf32>
    %163 = vector.extract_strided_slice %45 {offsets = [19, 0], sizes = [1, 256], strides = [1, 1]} : vector<32x256xf32> to vector<1x256xf32>
    %164 = vector.broadcast %162 : vector<4x1xf32> to vector<4x256xf32>
    %165 = vector.broadcast %163 : vector<1x256xf32> to vector<4x256xf32>
    %166 = arith.mulf %164, %165 : vector<4x256xf32>
    %167 = arith.addf %161, %166 : vector<4x256xf32>
    %168 = vector.extract_strided_slice %46 {offsets = [0, 20], sizes = [4, 1], strides = [1, 1]} : vector<4x32xf32> to vector<4x1xf32>
    %169 = vector.extract_strided_slice %45 {offsets = [20, 0], sizes = [1, 256], strides = [1, 1]} : vector<32x256xf32> to vector<1x256xf32>
    %170 = vector.broadcast %168 : vector<4x1xf32> to vector<4x256xf32>
    %171 = vector.broadcast %169 : vector<1x256xf32> to vector<4x256xf32>
    %172 = arith.mulf %170, %171 : vector<4x256xf32>
    %173 = arith.addf %167, %172 : vector<4x256xf32>
    %174 = vector.extract_strided_slice %46 {offsets = [0, 21], sizes = [4, 1], strides = [1, 1]} : vector<4x32xf32> to vector<4x1xf32>
    %175 = vector.extract_strided_slice %45 {offsets = [21, 0], sizes = [1, 256], strides = [1, 1]} : vector<32x256xf32> to vector<1x256xf32>
    %176 = vector.broadcast %174 : vector<4x1xf32> to vector<4x256xf32>
    %177 = vector.broadcast %175 : vector<1x256xf32> to vector<4x256xf32>
    %178 = arith.mulf %176, %177 : vector<4x256xf32>
    %179 = arith.addf %173, %178 : vector<4x256xf32>
    %180 = vector.extract_strided_slice %46 {offsets = [0, 22], sizes = [4, 1], strides = [1, 1]} : vector<4x32xf32> to vector<4x1xf32>
    %181 = vector.extract_strided_slice %45 {offsets = [22, 0], sizes = [1, 256], strides = [1, 1]} : vector<32x256xf32> to vector<1x256xf32>
    %182 = vector.broadcast %180 : vector<4x1xf32> to vector<4x256xf32>
    %183 = vector.broadcast %181 : vector<1x256xf32> to vector<4x256xf32>
    %184 = arith.mulf %182, %183 : vector<4x256xf32>
    %185 = arith.addf %179, %184 : vector<4x256xf32>
    %186 = vector.extract_strided_slice %46 {offsets = [0, 23], sizes = [4, 1], strides = [1, 1]} : vector<4x32xf32> to vector<4x1xf32>
    %187 = vector.extract_strided_slice %45 {offsets = [23, 0], sizes = [1, 256], strides = [1, 1]} : vector<32x256xf32> to vector<1x256xf32>
    %188 = vector.broadcast %186 : vector<4x1xf32> to vector<4x256xf32>
    %189 = vector.broadcast %187 : vector<1x256xf32> to vector<4x256xf32>
    %190 = arith.mulf %188, %189 : vector<4x256xf32>
    %191 = arith.addf %185, %190 : vector<4x256xf32>
    %192 = vector.extract_strided_slice %46 {offsets = [0, 24], sizes = [4, 1], strides = [1, 1]} : vector<4x32xf32> to vector<4x1xf32>
    %193 = vector.extract_strided_slice %45 {offsets = [24, 0], sizes = [1, 256], strides = [1, 1]} : vector<32x256xf32> to vector<1x256xf32>
    %194 = vector.broadcast %192 : vector<4x1xf32> to vector<4x256xf32>
    %195 = vector.broadcast %193 : vector<1x256xf32> to vector<4x256xf32>
    %196 = arith.mulf %194, %195 : vector<4x256xf32>
    %197 = arith.addf %191, %196 : vector<4x256xf32>
    %198 = vector.extract_strided_slice %46 {offsets = [0, 25], sizes = [4, 1], strides = [1, 1]} : vector<4x32xf32> to vector<4x1xf32>
    %199 = vector.extract_strided_slice %45 {offsets = [25, 0], sizes = [1, 256], strides = [1, 1]} : vector<32x256xf32> to vector<1x256xf32>
    %200 = vector.broadcast %198 : vector<4x1xf32> to vector<4x256xf32>
    %201 = vector.broadcast %199 : vector<1x256xf32> to vector<4x256xf32>
    %202 = arith.mulf %200, %201 : vector<4x256xf32>
    %203 = arith.addf %197, %202 : vector<4x256xf32>
    %204 = vector.extract_strided_slice %46 {offsets = [0, 26], sizes = [4, 1], strides = [1, 1]} : vector<4x32xf32> to vector<4x1xf32>
    %205 = vector.extract_strided_slice %45 {offsets = [26, 0], sizes = [1, 256], strides = [1, 1]} : vector<32x256xf32> to vector<1x256xf32>
    %206 = vector.broadcast %204 : vector<4x1xf32> to vector<4x256xf32>
    %207 = vector.broadcast %205 : vector<1x256xf32> to vector<4x256xf32>
    %208 = arith.mulf %206, %207 : vector<4x256xf32>
    %209 = arith.addf %203, %208 : vector<4x256xf32>
    %210 = vector.extract_strided_slice %46 {offsets = [0, 27], sizes = [4, 1], strides = [1, 1]} : vector<4x32xf32> to vector<4x1xf32>
    %211 = vector.extract_strided_slice %45 {offsets = [27, 0], sizes = [1, 256], strides = [1, 1]} : vector<32x256xf32> to vector<1x256xf32>
    %212 = vector.broadcast %210 : vector<4x1xf32> to vector<4x256xf32>
    %213 = vector.broadcast %211 : vector<1x256xf32> to vector<4x256xf32>
    %214 = arith.mulf %212, %213 : vector<4x256xf32>
    %215 = arith.addf %209, %214 : vector<4x256xf32>
    %216 = vector.extract_strided_slice %46 {offsets = [0, 28], sizes = [4, 1], strides = [1, 1]} : vector<4x32xf32> to vector<4x1xf32>
    %217 = vector.extract_strided_slice %45 {offsets = [28, 0], sizes = [1, 256], strides = [1, 1]} : vector<32x256xf32> to vector<1x256xf32>
    %218 = vector.broadcast %216 : vector<4x1xf32> to vector<4x256xf32>
    %219 = vector.broadcast %217 : vector<1x256xf32> to vector<4x256xf32>
    %220 = arith.mulf %218, %219 : vector<4x256xf32>
    %221 = arith.addf %215, %220 : vector<4x256xf32>
    %222 = vector.extract_strided_slice %46 {offsets = [0, 29], sizes = [4, 1], strides = [1, 1]} : vector<4x32xf32> to vector<4x1xf32>
    %223 = vector.extract_strided_slice %45 {offsets = [29, 0], sizes = [1, 256], strides = [1, 1]} : vector<32x256xf32> to vector<1x256xf32>
    %224 = vector.broadcast %222 : vector<4x1xf32> to vector<4x256xf32>
    %225 = vector.broadcast %223 : vector<1x256xf32> to vector<4x256xf32>
    %226 = arith.mulf %224, %225 : vector<4x256xf32>
    %227 = arith.addf %221, %226 : vector<4x256xf32>
    %228 = vector.extract_strided_slice %46 {offsets = [0, 30], sizes = [4, 1], strides = [1, 1]} : vector<4x32xf32> to vector<4x1xf32>
    %229 = vector.extract_strided_slice %45 {offsets = [30, 0], sizes = [1, 256], strides = [1, 1]} : vector<32x256xf32> to vector<1x256xf32>
    %230 = vector.broadcast %228 : vector<4x1xf32> to vector<4x256xf32>
    %231 = vector.broadcast %229 : vector<1x256xf32> to vector<4x256xf32>
    %232 = arith.mulf %230, %231 : vector<4x256xf32>
    %233 = arith.addf %227, %232 : vector<4x256xf32>
    %234 = vector.extract_strided_slice %46 {offsets = [0, 31], sizes = [4, 1], strides = [1, 1]} : vector<4x32xf32> to vector<4x1xf32>
    %235 = vector.extract_strided_slice %45 {offsets = [31, 0], sizes = [1, 256], strides = [1, 1]} : vector<32x256xf32> to vector<1x256xf32>
    %236 = vector.broadcast %234 : vector<4x1xf32> to vector<4x256xf32>
    %237 = vector.broadcast %235 : vector<1x256xf32> to vector<4x256xf32>
    %238 = arith.mulf %236, %237 : vector<4x256xf32>
    %239 = arith.addf %233, %238 : vector<4x256xf32>
    %c0_14 = arith.constant 0 : index
    %c0_15 = arith.constant 0 : index
    %240 = vector.load %arg9[%c0_14, %c0_15] : memref<4x256xf32, #tpu.memory_space<vmem>>, vector<4x256xf32>
    tpu.vector_store %arg9[%c0_14, %c0_15], %239 {strides = array<i32>} : memref<4x256xf32, #tpu.memory_space<vmem>>, vector<4x256xf32>,
    %c0_i32_16 = arith.constant 0 : i32
    %241 = arith.cmpi eq, %arg2, %c0_i32_16 : i32
    %242 = arith.extui %241 : i1 to i32
    %c0_i32_17 = arith.constant 0 : i32
    %243 = arith.cmpi ne, %242, %c0_i32_17 : i32
    scf.if %243 {
      %c0_18 = arith.constant 0 : index
      %c0_19 = arith.constant 0 : index
      %244 = vector.load %arg9[%c0_18, %c0_19] : memref<4x256xf32, #tpu.memory_space<vmem>>, vector<4x256xf32>
      %c0_20 = arith.constant 0 : index
      %c0_21 = arith.constant 0 : index
      %245 = vector.load %arg7[%c0_20, %c0_21] : memref<4x1xf32, #tpu.memory_space<vmem>>, vector<4x1xf32>
      %246 = vector.broadcast %245 : vector<4x1xf32> to vector<4x256xf32>
      %247 = arith.addf %244, %246 : vector<4x256xf32>
      %c0_22 = arith.constant 0 : index
      %c0_23 = arith.constant 0 : index
      %c0_24 = arith.constant 0 : index
      %248 = vector.load %arg8[%c0_22, %c0_23, %c0_24] : memref<1x4x256xf32, #tpu.memory_space<vmem>>, vector<1x4x256xf32>
      %249 = vector.shape_cast %248 : vector<1x4x256xf32> to vector<4x256xf32>
      %250 = vector.shape_cast %247 : vector<4x256xf32> to vector<1x4x256xf32>
      tpu.vector_store %arg8[%c0_22, %c0_23, %c0_24], %250 {strides = array<i32>} : memref<1x4x256xf32, #tpu.memory_space<vmem>>, vector<1x4x256xf32>,
    } else {
    }
    return
  }
  func.func @transform_0(%arg0: i32, %arg1: i32, %arg2: i32) -> (i32, i32, i32) {
    %c0_i32 = arith.constant 0 : i32
    %c0_i32_0 = arith.constant 0 : i32
    return %arg0, %c0_i32, %arg1 : i32, i32, i32
  }
  func.func @transform_1(%arg0: i32, %arg1: i32, %arg2: i32) -> (i32, i32) {
    %c0_i32 = arith.constant 0 : i32
    %c0_i32_0 = arith.constant 0 : i32
    return %arg2, %c0_i32 : i32, i32
  }
  func.func @transform_2(%arg0: i32, %arg1: i32, %arg2: i32) -> (i32, i32) {
    %c0_i32 = arith.constant 0 : i32
    %c0_i32_0 = arith.constant 0 : i32
    return %arg2, %c0_i32 : i32, i32
  }
  func.func @transform_3(%arg0: i32, %arg1: i32, %arg2: i32) -> (i32, i32) {
    %c0_i32 = arith.constant 0 : i32
    %c0_i32_0 = arith.constant 0 : i32
    return %c0_i32, %arg2 : i32, i32
  }
  func.func @transform_4(%arg0: i32, %arg1: i32, %arg2: i32) -> (i32, i32) {
    %c0_i32 = arith.constant 0 : i32
    %c0_i32_0 = arith.constant 0 : i32
    %c0_i32_1 = arith.constant 0 : i32
    return %c0_i32, %c0_i32_0 : i32, i32
  }
  func.func @transform_5(%arg0: i32, %arg1: i32, %arg2: i32) -> (i32, i32, i32) {
    %c0_i32 = arith.constant 0 : i32
    %c0_i32_0 = arith.constant 0 : i32
    return %arg0, %c0_i32, %arg1 : i32, i32, i32
  }
}

</mosaic_0001>

<bundles_post_ra>
// kernel: cmlp_forward.1
= control target key start
LH: loop header
LB: loop body
LE: loop exit
PB: predicated region body
PF: predicated region fallthrough
CT: control target
= control target key end

     0   :  { %s1630_s18 = smov 0   ;;  %s1632_s19 = smov 0   ;;  %s2066_s0 = inlined_call_operand.vmem [shape: f32[2,4,256], index: 0, kind: input, shape index: {}]   ;;  %s2067_s1 = inlined_call_operand.vmem [shape: f32[32,4], index: 1, kind: input, shape index: {}]   ;;  %s2068_s2 = inlined_call_operand.vmem [shape: f32[32,1], index: 2, kind: input, shape index: {}]   ;;  %s2069_s3 = inlined_call_operand.vmem [shape: f32[4,32], index: 3, kind: input, shape index: {}]   ;;  %s2070_s4 = inlined_call_operand.vmem [shape: f32[4,1], index: 4, kind: input, shape index: {}]   ;;  %s2071_s5 = inlined_call_operand.vmem [shape: f32[2,4,256], index: 5, kind: output, shape index: {}]  }
   0x1   :  { %s1634_s20 = smov 0  }
   0x2 LB: > { %s34_s21 = sadd.s32 1, %s1561_s19  ;;  %p1416_p0 = scmp.ge.s32.totalorder %s1565_s20, 1  ;;  %s1565_s20 = sphi %s1634_s20, %s15_s20   ;;  %s1561_s19 = sphi %s1632_s19, %s2073_s19   ;;  %s1557_s18 = sphi %s1630_s18, %s2072_s18  }
   0x3   : > { %p36_p1 = scmp.ge.s32.totalorder %s34_s21, 2  ;;  %p246_p2 = scmp.lt.s32.totalorder %s1565_s20, 3 }
   0x5   : > { %s2075_s21 = smov (%p36_p1, %s34_s21), 0  ;;  %p247_p3 = pnand %p1416_p0, %p246_p2 }
   0x6   : > { %v344_v0 = vld [vmem:[%s2068_s2 + $0x10] sm:$0xff] (!%p247_p3)  ;;  %v342_v1 = vld [vmem:[%s2068_s2] sm:$0xff] (!%p247_p3)  ;;  %v1567_v2 = vmov (!%p247_p3), 0   ;;  %v345_v3 = vld [vmem:[%s2068_s2 + $0x18] sm:$0xff] (!%p247_p3)  ;;  %v1568_v9 = vmov (!%p247_p3), 1   ;;  %v1569_v10 = vmov (!%p247_p3), 2   ;;  %v387_v35 = vlaneseq (!%p247_p3) }
   0x7   : > { %250 = sbr.rel (%p247_p3) target bundleno = 298 (0x12a), region = 40  ;;  %1483 = vset.pattern.permute.xlu1 (!%p247_p3), %v1567_v2  ;;  %1482 = vset.pattern.permute.xlu0 (!%p247_p3), %v1567_v2  ;;  %v343_v4 = vld [vmem:[%s2068_s2 + $0x8] sm:$0xff] (!%p247_p3)  ;;  %v338_v6 = vld [vmem:[%s2067_s1] sm:$0xff] (!%p247_p3)  ;;  %v341_v7 = vld [vmem:[%s2067_s1 + $0x18] sm:$0xff] (!%p247_p3)  ;;  %v1570_v11 = vmov (!%p247_p3), 3   ;;  %v1571_v13 = vmov (!%p247_p3), 4  }
   0x8   : > { %358 = vperm.xlu1 (!%p247_p3), %1483, %v344_v0   ;;  %348 = vperm.xlu0 (!%p247_p3), %1482, %v342_v1   ;;  %v339_v5 = vld [vmem:[%s2067_s1 + $0x8] sm:$0xff] (!%p247_p3)  ;;  %v340_v8 = vld [vmem:[%s2067_s1 + $0x10] sm:$0xff] (!%p247_p3)  ;;  %v1679_v12 = vld [vmem:[%s2069_s3] sm:$0xf] (!%p247_p3)  ;;  %v1572_v14 = vmov (!%p247_p3), 7   ;;  %v1573_v15 = vmov (!%p247_p3), 10  }
   0x9   : > { %v1574_v16 = vmov (!%p247_p3), 13   ;;  %v1575_v17 = vmov (!%p247_p3), 16   ;;  %v1576_v18 = vmov (!%p247_p3), 5   ;;  %v1577_v19 = vmov (!%p247_p3), 19   ;;  %p297_p4 = scmp.lt.s32.totalorder (!%p247_p3), %s1557_s18, 1 }
   0xa   : > { %v1578_v20 = vmov (!%p247_p3), 6   ;;  %v1579_v21 = vmov (!%p247_p3), 22   ;;  %v1580_v22 = vmov (!%p247_p3), 8   ;;  %v1581_v23 = vmov (!%p247_p3), 25  }
   0xb   : > { %v1582_v24 = vmov (!%p247_p3), 9   ;;  %v1583_v25 = vmov (!%p247_p3), 28   ;;  %v1584_v26 = vmov (!%p247_p3), 11   ;;  %v1585_v27 = vmov (!%p247_p3), 31  }
   0xc   : > { %363 = vperm.xlu1 (!%p247_p3), %1483, %v345_v3   ;;  %353 = vperm.xlu0 (!%p247_p3), %1482, %v343_v4   ;;  %v1586_v28 = vmov (!%p247_p3), 12   ;;  %v1587_v29 = vmov (!%p247_p3), 14   ;;  %v1588_v30 = vmov (!%p247_p3), 15   ;;  %v1589_v31 = vmov (!%p247_p3), 17  }
   0xd   : > { %v1590_v32 = vmov (!%p247_p3), 18   ;;  %v1591_v33 = vmov (!%p247_p3), 20   ;;  %v1592_v34 = vmov (!%p247_p3), 21   ;;  %v1593_v36 = vmov (!%p247_p3), 23  }
   0xe   : > { %s2077_s18 = smov (!%p297_p4, %s1557_s18), 1  ;;  %v1715_v37 = vshrl.u32 %v387_v35, 7  ;;  %v1594_v40 = vmov 24   ;;  %v1595_v49 = vmov 26   ;;  %v1596_v63 = vmov 27  }
   0xf   : > { %s1423_s15 = sshll.u32 %s2077_s18, 3 }
  0x10   : > { %373 = vperm.xlu1 %1483, %v339_v5   ;;  %368 = vperm.xlu0 %1482, %v338_v6   ;;  %s304_s22 = scalar_lea.vmem %s2066_s0, %s1423_s15  ;;  %v1725_v41 = vsub.s32 0, %v1715_v37  ;;  %v1728_v42 = vsub.s32 4, %v1715_v37  ;;  %v1738_v51 = vsub.s32 1, %v1715_v37  ;;  %v1741_v52 = vsub.s32 5, %v1715_v37  ;;  %s330_s27 = scalar_lea.vmem %s2071_s5, %s1423_s15 }
  0x11   : > { %v337_v45 = vld [vmem:[%s304_s22] sm:$0xff]  ;;  %v1751_v55 = vsub.s32 2, %v1715_v37  ;;  %v1754_v56 = vsub.s32 6, %v1715_v37  ;;  %v1768_v3 = vsub.s32 3, %v1715_v37  ;;  %v1771_v4 = vsub.s32 7, %v1715_v37 }
  0x12   : > { %v390_v46 = vrot.slane %v337_v45, %v1725_v41  ;;  %v394_v47 = vrot.slane %v337_v45, %v1728_v42  ;;  %v440_v58 = vrot.slane %v337_v45, %v1738_v51  ;;  %v444_v59 = vrot.slane %v337_v45, %v1741_v52 }
  0x13   : > { %v490_v0 = vrot.slane %v337_v45, %v1751_v55  ;;  %v494_v1 = vrot.slane %v337_v45, %v1754_v56 }
  0x14   : > { %383 = vperm.xlu1 %1483, %v341_v7   ;;  %378 = vperm.xlu0 %1482, %v340_v8   ;;  %v1745_v53 = vrot.slane %v390_v46, %v1725_v41  ;;  %v1748_v54 = vrot.slane %v394_v47, %v1725_v41 }
  0x18   : > { %1485 = vset.pattern.permute.xlu1 %v1568_v9  ;;  %1484 = vset.pattern.permute.xlu0 %v1568_v9 }
  0x19   : > { %426 = vperm.xlu1 %1485, %v339_v5   ;;  %422 = vperm.xlu0 %1484, %v338_v6  }
  0x1d   : > { %430 = vperm.xlu1 %1485, %v340_v8   ;;  %1486 = vset.pattern.permute.xlu0 %v1569_v10 }
  0x1e   : > { %472 = vperm.xlu0 %1486, %v338_v6  }
  0x21   : > { %1487 = vset.pattern.permute.xlu1 %v1570_v11 }
  0x22   : > { %522 = vperm.xlu1 %1487, %v338_v6   ;;  %476 = vperm.xlu0 %1486, %v339_v5   ;;  %v1777_v6 = vrot.slane %v444_v59, %v1738_v51 }
  0x26   : > { %1488 = vset.pattern.permute.xlu1 %v1568_v9  ;;  %480 = vperm.xlu0 %1486, %v340_v8  }
  0x27   : > { %434 = vperm.xlu1 %1488, %v341_v7  }
  0x2a   : > { %1491 = vset.pattern.permute.xlu0 %v1570_v11 }
  0x2b   : > { %1489 = vset.pattern.permute.xlu1 %v1570_v11  ;;  %530 = vperm.xlu0 %1491, %v340_v8  }
  0x2c   : > { %526 = vperm.xlu1 %1489, %v339_v5   ;;  %v1774_v5 = vrot.slane %v440_v58, %v1738_v51 }
  0x2f   : > { %1494 = vset.pattern.permute.xlu0 %v1568_v9 }
  0x30   : > { %1490 = vset.pattern.permute.xlu1 %v1569_v10  ;;  %666 = vperm.xlu0 %1494, %v1679_v12  }
  0x31   : > { %484 = vperm.xlu1 %1490, %v341_v7  }
  0x34   : > { %1497 = vset.pattern.permute.xlu0 %v1571_v13 }
  0x35   : > { %1492 = vset.pattern.permute.xlu1 %v1570_v11  ;;  %723 = vperm.xlu0 %1497, %v1679_v12  }
  0x36   : > { %534 = vperm.xlu1 %1492, %v341_v7  }
  0x39   : > { %1500 = vset.pattern.permute.xlu0 %v1572_v14 }
  0x3a   : > { %1493 = vset.pattern.permute.xlu1 %v1567_v2  ;;  %780 = vperm.xlu0 %1500, %v1679_v12  }
  0x3b   : > { %647 = vperm.xlu1 %1493, %v1679_v12  }
  0x3e   : > { %1503 = vset.pattern.permute.xlu0 %v1573_v15  ;;  %v1783_v15 = vrot.slane %v490_v0, %v1751_v55 }
  0x3f   : > { %1495 = vset.pattern.permute.xlu1 %v1569_v10  ;;  %837 = vperm.xlu0 %1503, %v1679_v12  }
  0x40   : > { %685 = vperm.xlu1 %1495, %v1679_v12  }
  0x43   : > { %1506 = vset.pattern.permute.xlu0 %v1574_v16  ;;  %v1786_v16 = vrot.slane %v494_v1, %v1751_v55 }
  0x44   : > { %1496 = vset.pattern.permute.xlu1 %v1570_v11  ;;  %894 = vperm.xlu0 %1506, %v1679_v12   ;;  %v1597_v11 = vmov 29  }
  0x45   : > { %704 = vperm.xlu1 %1496, %v1679_v12  }
  0x48   : > { %1509 = vset.pattern.permute.xlu0 %v1575_v17  ;;  %v540_v17 = vrot.slane %v337_v45, %v1768_v3 }
  0x49   : > { %1498 = vset.pattern.permute.xlu1 %v1576_v18  ;;  %951 = vperm.xlu0 %1509, %v1679_v12   ;;  %v544_v18 = vrot.slane %v337_v45, %v1771_v4 }
  0x4a   : > { %742 = vperm.xlu1 %1498, %v1679_v12  }
  0x4d   : > { %1512 = vset.pattern.permute.xlu0 %v1577_v19 }
  0x4e   : > { %1499 = vset.pattern.permute.xlu1 %v1578_v20  ;;  %1008 = vperm.xlu0 %1512, %v1679_v12  }
  0x4f   : > { %761 = vperm.xlu1 %1499, %v1679_v12  }
  0x52   : > { %1515 = vset.pattern.permute.xlu0 %v1579_v21 }
  0x53   : > { %1501 = vset.pattern.permute.xlu1 %v1580_v22  ;;  %1065 = vperm.xlu0 %1515, %v1679_v12  }
  0x54   : > { %799 = vperm.xlu1 %1501, %v1679_v12  }
  0x57   : > { %1518 = vset.pattern.permute.xlu0 %v1581_v23 }
  0x58   : > { %1502 = vset.pattern.permute.xlu1 %v1582_v24  ;;  %1122 = vperm.xlu0 %1518, %v1679_v12  }
  0x59   : > { %818 = vperm.xlu1 %1502, %v1679_v12  }
  0x5c   : > { %1521 = vset.pattern.permute.xlu0 %v1583_v25  ;;  %v1598_v25 = vmov 30  }
  0x5d   : > { %1504 = vset.pattern.permute.xlu1 %v1584_v26  ;;  %1179 = vperm.xlu0 %1521, %v1679_v12   ;;  %v1793_v26 = vrot.slane %v540_v17, %v1768_v3 }
  0x5e   : > { %856 = vperm.xlu1 %1504, %v1679_v12  }
  0x61   : > { %1524 = vset.pattern.permute.xlu0 %v1585_v27  ;;  %v1796_v27 = vrot.slane %v544_v18, %v1768_v3 }
  0x62   : > { %1505 = vset.pattern.permute.xlu1 %v1586_v28  ;;  %1236 = vperm.xlu0 %1524, %v1679_v12  }
  0x63   : > { %875 = vperm.xlu1 %1505, %v1679_v12  }
  0x66   : > { %1526 = vset.pattern.permute.xlu0 %v1567_v2 }
  0x67   : > { %1507 = vset.pattern.permute.xlu1 %v1587_v29 }
  0x68   : > { %913 = vperm.xlu1 %1507, %v1679_v12  }
  0x6c   : > { %1508 = vset.pattern.permute.xlu1 %v1588_v30 }
  0x6d   : > { %932 = vperm.xlu1 %1508, %v1679_v12  }
  0x71   : > { %1510 = vset.pattern.permute.xlu1 %v1589_v31  ;;  %v1259_v31 = vld [vmem:[%s2070_s4] sm:$0xf] }
  0x72   : > { %970 = vperm.xlu1 %1510, %v1679_v12  }
  0x76   : > { %1511 = vset.pattern.permute.xlu1 %v1590_v32 }
  0x77   : > { %989 = vperm.xlu1 %1511, %v1679_v12  }
  0x7b   : > { %1513 = vset.pattern.permute.xlu1 %v1591_v33 }
  0x7c   : > { %1027 = vperm.xlu1 %1513, %v1679_v12  }
  0x80   : > { %1514 = vset.pattern.permute.xlu1 %v1592_v34 }
  0x81   : > { %1046 = vperm.xlu1 %1514, %v1679_v12  }
  0x85   : > { %1516 = vset.pattern.permute.xlu1 %v1593_v36 }
  0x86   : > { %1084 = vperm.xlu1 %1516, %v1679_v12  }
  0x87   : > { %v1717_v38 = vpop.permute.xlu1 %358  ;;  %v349_v39 = vpop.permute.xlu0 %348 }
  0x8a   : > { %1517 = vset.pattern.permute.xlu1 %v1594_v40 }
  0x8b   : > { %v1730_v43 = vpop.permute.xlu1 %363  ;;  %v1732_v44 = vpop.permute.xlu0 %353  ;;  %1103 = vperm.xlu1 %1517, %v1679_v12  }
  0x8f   : > { %v374_v48 = vpop.permute.xlu1 %373  ;;  %1519 = vset.pattern.permute.xlu1 %v1595_v49  ;;  %v369_v50 = vpop.permute.xlu0 %368 }
  0x90   : > { %1141 = vperm.xlu1 %1519, %v1679_v12   ;;  %v405_v60 = vmul.f32 %v1745_v53, %v369_v50  ;;  %v406_v61 = vmul.f32 %v1748_v54, %v369_v50  ;;  %v407_v34 = vmul.f32 %v1745_v53, %v374_v48  ;;  %v408_v35 = vmul.f32 %v1748_v54, %v374_v48 }
  0x92   : > { %v413_v7 = vadd.f32 %v405_v60, %v349_v39  ;;  %v414_v8 = vadd.f32 %v406_v61, %v349_v39  ;;  %v416_v48 = vadd.f32 %v408_v35, %v1732_v44 }
  0x93   : > { %v1756_v57 = vpop.permute.xlu1 %383  ;;  %v1762_v62 = vpop.permute.xlu0 %378 }
  0x94   : > { %1520 = vset.pattern.permute.xlu1 %v1596_v63  ;;  %v409_v17 = vmul.f32 %v1745_v53, %v1762_v62 }
  0x95   : > { %1160 = vperm.xlu1 %1520, %v1679_v12  }
  0x98   : > { %v427_v9 = vpop.permute.xlu1 %426  ;;  %v423_v10 = vpop.permute.xlu0 %422 }
  0x99   : > { %1522 = vset.pattern.permute.xlu1 %v1597_v11  ;;  %v455_v13 = vmul.f32 %v1774_v5, %v423_v10  ;;  %v456_v14 = vmul.f32 %v1777_v6, %v423_v10  ;;  %v457_v40 = vmul.f32 %v1774_v5, %v427_v9  ;;  %v458_v45 = vmul.f32 %v1777_v6, %v427_v9 }
  0x9a   : > { %1198 = vperm.xlu1 %1522, %v1679_v12  }
  0x9b   : > { %v463_v19 = vadd.f32 %v455_v13, %v413_v7  ;;  %v464_v20 = vadd.f32 %v456_v14, %v414_v8  ;;  %v466_v63 = vadd.f32 %v458_v45, %v416_v48 }
  0x9c   : > { %v431_v21 = vpop.permute.xlu1 %430 }
  0x9d   : > { %v473_v22 = vpop.permute.xlu0 %472 }
  0x9e   : > { %v505_v23 = vmul.f32 %v1783_v15, %v473_v22  ;;  %v506_v24 = vmul.f32 %v1786_v16, %v473_v22  ;;  %1523 = vset.pattern.permute.xlu1 %v1598_v25 }
  0x9f   : > { %1217 = vperm.xlu1 %1523, %v1679_v12  }
  0xa0   : > { %v513_v28 = vadd.f32 %v505_v23, %v463_v19  ;;  %v514_v29 = vadd.f32 %v506_v24, %v464_v20  ;;  %v410_v23 = vmul.f32 %v1748_v54, %v1762_v62  ;;  %v459_v24 = vmul.f32 %v1774_v5, %v431_v21 }
  0xa1   : > { %v523_v30 = vpop.permute.xlu1 %522  ;;  %v477_v39 = vpop.permute.xlu0 %476 }
  0xa2   : > { %v555_v32 = vmul.f32 %v1793_v26, %v523_v30  ;;  %v556_v33 = vmul.f32 %v1796_v27, %v523_v30  ;;  %v507_v50 = vmul.f32 %v1783_v15, %v477_v39  ;;  %v508_v58 = vmul.f32 %v1786_v16, %v477_v39 }
  0xa3   : > { %1525 = vset.pattern.permute.xlu1 %v1567_v2  ;;  %v415_v2 = vadd.f32 %v407_v34, %v1732_v44  ;;  %v460_v30 = vmul.f32 %v1777_v6, %v431_v21  ;;  %v418_v35 = vadd.f32 %v410_v23, %v1717_v38 }
  0xa4   : > { %v1807_v36 = vadd.f32 %v555_v32, %v513_v28  ;;  %v1809_v12 = vadd.f32 %v556_v33, %v514_v29  ;;  %1262 = vperm.xlu1 %1525, %v1259_v31   ;;  %v516_v8 = vadd.f32 %v508_v58, %v466_v63  ;;  %v417_v32 = vadd.f32 %v409_v17, %v1717_v38 }
  0xa5   : > { %v465_v61 = vadd.f32 %v457_v40, %v415_v2  ;;  %v481_v9 = vpop.permute.xlu0 %480  ;;  %v468_v21 = vadd.f32 %v460_v30, %v418_v35 }
  0xa6   : > { %v571_v46 = vmul.f32 %v1807_v36, %v1807_v36  ;;  %v572_v47 = vmul.f32 %v1809_v12, %v1809_v12  ;;  %v1817_v49 = vpop.permute.xlu1 %434  ;;  %v509_v33 = vmul.f32 %v1783_v15, %v481_v9  ;;  %v510_v39 = vmul.f32 %v1786_v16, %v481_v9 }
  0xa7   : > { %v515_v7 = vadd.f32 %v507_v50, %v465_v61  ;;  %v467_v40 = vadd.f32 %v459_v24, %v417_v32  ;;  %v411_v24 = vmul.f32 %v1745_v53, %v1756_v57  ;;  %v461_v32 = vmul.f32 %v1774_v5, %v1817_v49 }
  0xa8   : > { %v579_v59 = vmul.f32 %v571_v46, %v1807_v36  ;;  %v580_v60 = vmul.f32 %v572_v47, %v1809_v12 }
  0xa9   : > { %v517_v50 = vadd.f32 %v509_v33, %v467_v40 }
  0xaa   : > { %v587_v0 = vmul.f32 0.044715, %v579_v59  ;;  %v588_v1 = vmul.f32 0.044715, %v580_v60  ;;  %v531_v31 = vpop.permute.xlu0 %530  ;;  %v518_v60 = vadd.f32 %v510_v39, %v468_v21 }
  0xab   : > { %v527_v10 = vpop.permute.xlu1 %526  ;;  %v559_v45 = vmul.f32 %v1793_v26, %v531_v31  ;;  %v560_v2 = vmul.f32 %v1796_v27, %v531_v31 }
  0xac   : > { %v595_v11 = vadd.f32 %v587_v0, %v1807_v36  ;;  %v596_v44 = vadd.f32 %v588_v1, %v1809_v12  ;;  %v557_v13 = vmul.f32 %v1793_v26, %v527_v10  ;;  %v558_v14 = vmul.f32 %v1796_v27, %v527_v10 }
  0xad   : > { %v1857_v61 = vadd.f32 %v559_v45, %v517_v50  ;;  %v1859_v38 = vadd.f32 %v560_v2, %v518_v60 }
  0xae   : > { %v603_v18 = vmul.f32 0.7978846, %v595_v11  ;;  %v604_v19 = vmul.f32 0.7978846, %v596_v44  ;;  %v1831_v20 = vadd.f32 %v557_v13, %v515_v7  ;;  %v1833_v22 = vadd.f32 %v558_v14, %v516_v8 }
  0xaf   : > { %v575_v11 = vmul.f32 %v1857_v61, %v1857_v61  ;;  %v576_v13 = vmul.f32 %v1859_v38, %v1859_v38  ;;  %v667_v31 = vpop.permute.xlu0 %666 }
  0xb0   : > { %1527 = vtanh.f32 %v603_v18  ;;  %v573_v25 = vmul.f32 %v1831_v20, %v1831_v20  ;;  %v574_v28 = vmul.f32 %v1833_v22, %v1833_v22  ;;  %v1842_v29 = vpop.permute.xlu1 %484 }
  0xb1   : > { %1529 = vtanh.f32 %v604_v19  ;;  %v583_v23 = vmul.f32 %v575_v11, %v1857_v61  ;;  %v511_v45 = vmul.f32 %v1783_v15, %v1842_v29 }
  0xb2   : > { %v581_v62 = vmul.f32 %v573_v25, %v1831_v20  ;;  %v582_v34 = vmul.f32 %v574_v28, %v1833_v22  ;;  %v584_v25 = vmul.f32 %v576_v13, %v1859_v38 }
  0xb3   : > { %v591_v35 = vmul.f32 0.044715, %v583_v23 }
  0xb4   : > { %v589_v46 = vmul.f32 0.044715, %v581_v62  ;;  %v590_v47 = vmul.f32 0.044715, %v582_v34  ;;  %v462_v34 = vmul.f32 %v1777_v6, %v1817_v49  ;;  %v512_v49 = vmul.f32 %v1786_v16, %v1842_v29 }
  0xb5   : > { %v1853_v48 = vpop.permute.xlu1 %534  ;;  %v599_v6 = vadd.f32 %v591_v35, %v1857_v61 }
  0xb6   : > { %v597_v58 = vadd.f32 %v589_v46, %v1831_v20  ;;  %v598_v59 = vadd.f32 %v590_v47, %v1833_v22  ;;  %v562_v23 = vmul.f32 %v1796_v27, %v1853_v48 }
  0xb7   : > { %v607_v13 = vmul.f32 0.7978846, %v599_v6 }
  0xb8   : > { %v605_v63 = vmul.f32 0.7978846, %v597_v58  ;;  %v606_v1 = vmul.f32 0.7978846, %v598_v59 }
  0xba   : > { %v1528_v0 = vpop.eup %1527  ;;  %v648_v7 = vpop.permute.xlu1 %647  ;;  %1531 = vtanh.f32 %v605_v63 }
  0xbb   : > { %v1530_v8 = vpop.eup %1529  ;;  %v619_v9 = vadd.f32 1.0, %v1528_v0  ;;  %1533 = vtanh.f32 %v606_v1 }
  0xbc   : > { %v620_v10 = vadd.f32 1.0, %v1530_v8  ;;  %1535 = vtanh.f32 %v607_v13 }
  0xbd   : > { %v627_v44 = vmul.f32 0.5, %v619_v9 }
  0xbe   : > { %v628_v14 = vmul.f32 0.5, %v620_v10 }
  0xbf   : > { %v1866_v17 = vmul.f32 %v627_v44, %v1807_v36  ;;  %v686_v18 = vpop.permute.xlu1 %685  ;;  %v412_v36 = vmul.f32 %v1748_v54, %v1756_v57  ;;  %v419_v54 = vadd.f32 %v411_v24, %v1730_v43  ;;  %v592_v57 = vmul.f32 0.044715, %v584_v25  ;;  %v724_v24 = vpop.permute.xlu0 %723 }
  0xc0   : > { %v1869_v19 = vmul.f32 %v628_v14, %v1809_v12  ;;  %v561_v14 = vmul.f32 %v1793_v26, %v1853_v48 }
  0xc1   : > { %v672_v28 = vrot.slane %v1866_v17, %v1738_v51  ;;  %v653_v30 = vrot.slane %v1866_v17, %v1725_v41  ;;  %v420_v5 = vadd.f32 %v412_v36, %v1730_v43  ;;  %v469_v21 = vadd.f32 %v461_v32, %v419_v54 }
  0xc2   : > { %v676_v12 = vrot.slane %v1869_v19, %v1738_v51  ;;  %v657_v53 = vrot.slane %v1869_v19, %v1725_v41  ;;  %v691_v60 = vrot.slane %v1866_v17, %v1751_v55  ;;  %v600_v63 = vadd.f32 %v592_v57, %v1859_v38 }
  0xc3   : > { %v677_v33 = vmul.f32 %v672_v28, %v667_v31  ;;  %v658_v62 = vmul.f32 %v653_v30, %v648_v7  ;;  %v470_v59 = vadd.f32 %v462_v34, %v420_v5  ;;  %v519_v15 = vadd.f32 %v511_v45, %v469_v21 }
  0xc4   : > { %v678_v39 = vmul.f32 %v676_v12, %v667_v31  ;;  %v705_v40 = vpop.permute.xlu1 %704  ;;  %v659_v46 = vmul.f32 %v657_v53, %v648_v7  ;;  %v1532_v47 = vpop.eup %1531  ;;  %v729_v43 = vrot.slane %v1866_v17, %v1728_v42  ;;  %v695_v0 = vrot.slane %v1869_v19, %v1751_v55 }
  0xc5   : > { %v1534_v58 = vpop.eup %1533  ;;  %v621_v7 = vadd.f32 1.0, %v1532_v47  ;;  %v733_v8 = vrot.slane %v1869_v19, %v1728_v42  ;;  %v696_v9 = vmul.f32 %v691_v60, %v686_v18  ;;  %v710_v16 = vrot.slane %v1866_v17, %v1768_v3 }
  0xc6   : > { %v681_v2 = vcombine.low %v677_v33, %v678_v39  ;;  %v662_v50 = vcombine.low %v658_v62, %v659_v46  ;;  %v622_v29 = vadd.f32 1.0, %v1534_v58  ;;  %v697_v11 = vmul.f32 %v695_v0, %v686_v18 }
  0xc7   : > { %v714_v44 = vrot.slane %v1869_v19, %v1768_v3  ;;  %v715_v25 = vmul.f32 %v710_v16, %v705_v40  ;;  %v608_v28 = vmul.f32 0.7978846, %v600_v63  ;;  %v734_v30 = vmul.f32 %v729_v43, %v724_v24 }
  0xc8   : > { %v683_v10 = vadd.f32 %v681_v2, %v662_v50  ;;  %v700_v36 = vcombine.low %v696_v9, %v697_v11  ;;  %v629_v12 = vmul.f32 0.5, %v621_v7  ;;  %v735_v32 = vmul.f32 %v733_v8, %v724_v24  ;;  %v781_v2 = vpop.permute.xlu0 %780  ;;  %v1536_v11 = vpop.eup %1535 }
  0xc9   : > { %v743_v1 = vpop.permute.xlu1 %742  ;;  %v716_v31 = vmul.f32 %v714_v44, %v705_v40  ;;  %v748_v18 = vrot.slane %v1866_v17, %v1741_v52  ;;  %v752_v33 = vrot.slane %v1869_v19, %v1741_v52  ;;  %v630_v62 = vmul.f32 0.5, %v622_v29 }
  0xca   : > { %v520_v26 = vadd.f32 %v512_v49, %v470_v59  ;;  %v702_v34 = vadd.f32 %v700_v36, %v683_v10  ;;  %v1917_v27 = vadd.f32 %v561_v14, %v519_v15  ;;  %1537 = vtanh.f32 %v608_v28 }
  0xcb   : > { %v719_v35 = vcombine.low %v715_v25, %v716_v31  ;;  %v753_v48 = vmul.f32 %v748_v18, %v743_v1  ;;  %v754_v39 = vmul.f32 %v752_v33, %v743_v1  ;;  %v786_v54 = vrot.slane %v1866_v17, %v1771_v4 }
  0xcc   : > { %v1919_v40 = vadd.f32 %v562_v23, %v520_v26  ;;  %v1924_v45 = vmul.f32 %v629_v12, %v1831_v20  ;;  %v738_v46 = vcombine.low %v734_v30, %v735_v32  ;;  %v790_v5 = vrot.slane %v1869_v19, %v1771_v4  ;;  %v838_v23 = vpop.permute.xlu0 %837 }
  0xcd   : > { %v721_v57 = vadd.f32 %v719_v35, %v702_v34  ;;  %v1929_v47 = vmul.f32 %v630_v62, %v1833_v22  ;;  %v757_v58 = vcombine.low %v753_v48, %v754_v39  ;;  %v767_v59 = vrot.slane %v1866_v17, %v1754_v56 }
  0xce   : > { %v762_v53 = vpop.permute.xlu1 %761  ;;  %v771_v6 = vrot.slane %v1869_v19, %v1754_v56  ;;  %v577_v20 = vmul.f32 %v1917_v27, %v1917_v27  ;;  %v578_v49 = vmul.f32 %v1919_v40, %v1919_v40  ;;  %v791_v60 = vmul.f32 %v786_v54, %v781_v2 }
  0xcf   : > { %v740_v50 = vadd.f32 %v738_v46, %v721_v57  ;;  %v792_v63 = vmul.f32 %v790_v5, %v781_v2  ;;  %v772_v22 = vmul.f32 %v767_v59, %v762_v53  ;;  %v805_v43 = vrot.slane %v1924_v45, %v1725_v41 }
  0xd0   : > { %v773_v15 = vmul.f32 %v771_v6, %v762_v53  ;;  %v843_v0 = vrot.slane %v1924_v45, %v1751_v55  ;;  %v809_v17 = vrot.slane %v1929_v47, %v1725_v41  ;;  %v847_v19 = vrot.slane %v1929_v47, %v1751_v55 }
  0xd1   : > { %v759_v1 = vadd.f32 %v757_v58, %v740_v50  ;;  %v824_v29 = vrot.slane %v1924_v45, %v1738_v51  ;;  %v828_v10 = vrot.slane %v1929_v47, %v1738_v51  ;;  %v585_v44 = vmul.f32 %v577_v20, %v1917_v27 }
  0xd2   : > { %v776_v7 = vcombine.low %v772_v22, %v773_v15  ;;  %v586_v13 = vmul.f32 %v578_v49, %v1919_v40  ;;  %v795_v14 = vcombine.low %v791_v60, %v792_v63  ;;  %v848_v28 = vmul.f32 %v843_v0, %v838_v23  ;;  %v895_v0 = vpop.permute.xlu0 %894 }
  0xd3   : > { %v800_v21 = vpop.permute.xlu1 %799  ;;  %v849_v12 = vmul.f32 %v847_v19, %v838_v23  ;;  %v862_v18 = vrot.slane %v1924_v45, %v1768_v3  ;;  %v866_v33 = vrot.slane %v1929_v47, %v1768_v3  ;;  %v623_v53 = vadd.f32 1.0, %v1536_v11 }
  0xd4   : > { %v810_v8 = vmul.f32 %v805_v43, %v800_v21  ;;  %v811_v16 = vmul.f32 %v809_v17, %v800_v21  ;;  %v778_v24 = vadd.f32 %v776_v7, %v759_v1  ;;  %v1538_v25 = vpop.eup %1537  ;;  %v593_v54 = vmul.f32 0.044715, %v585_v44 }
  0xd5   : > { %v624_v34 = vadd.f32 1.0, %v1538_v25  ;;  %v594_v57 = vmul.f32 0.044715, %v586_v13  ;;  %v852_v46 = vcombine.low %v848_v28, %v849_v12  ;;  %v900_v5 = vrot.slane %v1924_v45, %v1741_v52 }
  0xd6   : > { %v814_v30 = vcombine.low %v810_v8, %v811_v16  ;;  %v797_v32 = vadd.f32 %v795_v14, %v778_v24  ;;  %v904_v2 = vrot.slane %v1929_v47, %v1741_v52  ;;  %v881_v58 = vrot.slane %v1924_v45, %v1728_v42 }
  0xd7   : > { %v885_v59 = vrot.slane %v1929_v47, %v1728_v42  ;;  %v631_v6 = vmul.f32 0.5, %v623_v53  ;;  %v632_v20 = vmul.f32 0.5, %v624_v34  ;;  %v601_v15 = vadd.f32 %v593_v54, %v1917_v27 }
  0xd8   : > { %v819_v9 = vpop.permute.xlu1 %818  ;;  %v816_v35 = vadd.f32 %v814_v30, %v797_v32  ;;  %v602_v43 = vadd.f32 %v594_v57, %v1919_v40  ;;  %v905_v17 = vmul.f32 %v900_v5, %v895_v0  ;;  %v906_v19 = vmul.f32 %v904_v2, %v895_v0 }
  0xd9   : > { %v829_v36 = vmul.f32 %v824_v29, %v819_v9  ;;  %v830_v31 = vmul.f32 %v828_v10, %v819_v9  ;;  %v1968_v8 = vmul.f32 %v631_v6, %v1857_v61  ;;  %v1971_v9 = vmul.f32 %v632_v20, %v1859_v38 }
  0xda   : > { %v919_v16 = vrot.slane %v1924_v45, %v1754_v56  ;;  %v923_v29 = vrot.slane %v1929_v47, %v1754_v56  ;;  %v609_v14 = vmul.f32 0.7978846, %v601_v15  ;;  %v909_v23 = vcombine.low %v905_v17, %v906_v19 }
  0xdb   : > { %v833_v62 = vcombine.low %v829_v36, %v830_v31  ;;  %v610_v24 = vmul.f32 0.7978846, %v602_v43  ;;  %v957_v61 = vrot.slane %v1968_v8, %v1725_v41  ;;  %v961_v38 = vrot.slane %v1971_v9, %v1725_v41 }
  0xdc   : > { %v938_v30 = vrot.slane %v1924_v45, %v1771_v4  ;;  %v942_v36 = vrot.slane %v1929_v47, %v1771_v4  ;;  %1539 = vtanh.f32 %v609_v14  ;;  %v976_v34 = vrot.slane %v1968_v8, %v1738_v51 }
  0xdd   : > { %v857_v26 = vpop.permute.xlu1 %856  ;;  %v835_v21 = vadd.f32 %v833_v62, %v816_v35  ;;  %1541 = vtanh.f32 %v610_v24  ;;  %v980_v35 = vrot.slane %v1971_v9, %v1738_v51  ;;  %v995_v5 = vrot.slane %v1968_v8, %v1751_v55 }
  0xde   : > { %v867_v48 = vmul.f32 %v862_v18, %v857_v26  ;;  %v868_v39 = vmul.f32 %v866_v33, %v857_v26  ;;  %v952_v18 = vpop.permute.xlu0 %951  ;;  %v1018_v6 = vrot.slane %v1971_v9, %v1768_v3  ;;  %v1033_v0 = vrot.slane %v1968_v8, %v1728_v42 }
  0xdf   : > { %v854_v49 = vadd.f32 %v852_v46, %v835_v21  ;;  %v962_v33 = vmul.f32 %v957_v61, %v952_v18  ;;  %v963_v53 = vmul.f32 %v961_v38, %v952_v18  ;;  %v999_v21 = vrot.slane %v1971_v9, %v1751_v55 }
  0xe0   : > { %v871_v50 = vcombine.low %v867_v48, %v868_v39  ;;  %v1037_v17 = vrot.slane %v1971_v9, %v1728_v42  ;;  %v1052_v14 = vrot.slane %v1968_v8, %v1741_v52 }
  0xe1   : > { %v966_v54 = vcombine.low %v962_v33, %v963_v53 }
  0xe2   : > { %v876_v60 = vpop.permute.xlu1 %875  ;;  %v873_v1 = vadd.f32 %v871_v50, %v854_v49  ;;  %v1009_v2 = vpop.permute.xlu0 %1008 }
  0xe3   : > { %v886_v63 = vmul.f32 %v881_v58, %v876_v60  ;;  %v887_v22 = vmul.f32 %v885_v59, %v876_v60  ;;  %v1014_v59 = vrot.slane %v1968_v8, %v1768_v3 }
  0xe5   : > { %v890_v7 = vcombine.low %v886_v63, %v887_v22  ;;  %v1019_v63 = vmul.f32 %v1014_v59, %v1009_v2  ;;  %v1020_v22 = vmul.f32 %v1018_v6, %v1009_v2 }
  0xe6   : > { %v1540_v58 = vpop.eup %1539  ;;  %v1066_v38 = vpop.permute.xlu0 %1065 }
  0xe7   : > { %v892_v10 = vadd.f32 %v890_v7, %v873_v1  ;;  %v914_v11 = vpop.permute.xlu1 %913  ;;  %v1542_v60 = vpop.eup %1541  ;;  %v625_v7 = vadd.f32 1.0, %v1540_v58 }
  0xe8   : > { %v924_v44 = vmul.f32 %v919_v16, %v914_v11  ;;  %v925_v13 = vmul.f32 %v923_v29, %v914_v11  ;;  %v626_v16 = vadd.f32 1.0, %v1542_v60  ;;  %v1023_v11 = vcombine.low %v1019_v63, %v1020_v22 }
  0xe9   : > { %v911_v25 = vadd.f32 %v909_v23, %v892_v10  ;;  %v1056_v23 = vrot.slane %v1971_v9, %v1741_v52  ;;  %v633_v24 = vmul.f32 0.5, %v625_v7 }
  0xea   : > { %v928_v28 = vcombine.low %v924_v44, %v925_v13  ;;  %v634_v61 = vmul.f32 0.5, %v626_v16 }
  0xeb   : > { %v2010_v53 = vmul.f32 %v633_v24, %v1917_v27 }
  0xec   : > { %v933_v31 = vpop.permute.xlu1 %932  ;;  %v930_v62 = vadd.f32 %v928_v28, %v911_v25  ;;  %v1071_v28 = vrot.slane %v1968_v8, %v1754_v56 }
  0xed   : > { %v943_v12 = vmul.f32 %v938_v30, %v933_v31  ;;  %v944_v32 = vmul.f32 %v942_v36, %v933_v31  ;;  %v1075_v30 = vrot.slane %v1971_v9, %v1754_v56  ;;  %v1185_v7 = vrot.slane %v2010_v53, %v1728_v42 }
  0xef   : > { %v947_v26 = vcombine.low %v943_v12, %v944_v32  ;;  %v1076_v12 = vmul.f32 %v1071_v28, %v1066_v38  ;;  %v1077_v32 = vmul.f32 %v1075_v30, %v1066_v38 }
  0xf1   : > { %v949_v45 = vadd.f32 %v947_v26, %v930_v62  ;;  %v971_v48 = vpop.permute.xlu1 %970  ;;  %v2013_v62 = vmul.f32 %v634_v61, %v1919_v40  ;;  %v1090_v26 = vrot.slane %v1968_v8, %v1771_v4 }
  0xf2   : > { %v981_v39 = vmul.f32 %v976_v34, %v971_v48  ;;  %v982_v47 = vmul.f32 %v980_v35, %v971_v48  ;;  %v1094_v34 = vrot.slane %v1971_v9, %v1771_v4  ;;  %v1123_v9 = vpop.permute.xlu0 %1122 }
  0xf3   : > { %v968_v57 = vadd.f32 %v966_v54, %v949_v45  ;;  %v1128_v54 = vrot.slane %v2010_v53, %v1738_v51  ;;  %v1132_v27 = vrot.slane %v2013_v62, %v1738_v51  ;;  %v1113_v8 = vrot.slane %v2013_v62, %v1725_v41 }
  0xf4   : > { %v985_v46 = vcombine.low %v981_v39, %v982_v47  ;;  %v1080_v47 = vcombine.low %v1076_v12, %v1077_v32  ;;  %v1151_v51 = vrot.slane %v2013_v62, %v1751_v55 }
  0xf5   : > { %v1134_v58 = vmul.f32 %v1132_v27, %v1123_v9 }
  0xf6   : > { %v990_v50 = vpop.permute.xlu1 %989  ;;  %v987_v15 = vadd.f32 %v985_v46, %v968_v57  ;;  %v1109_v46 = vrot.slane %v2010_v53, %v1725_v41 }
  0xf7   : > { %v1000_v20 = vmul.f32 %v995_v5, %v990_v50  ;;  %v1001_v49 = vmul.f32 %v999_v21, %v990_v50  ;;  %v1133_v50 = vmul.f32 %v1128_v54, %v1123_v9 }
  0xf9   : > { %v1004_v43 = vcombine.low %v1000_v20, %v1001_v49  ;;  %v1147_v20 = vrot.slane %v2010_v53, %v1751_v55  ;;  %v1189_v55 = vrot.slane %v2013_v62, %v1728_v42 }
  0xfb   : > { %v1006_v19 = vadd.f32 %v1004_v43, %v987_v15  ;;  %v1028_v1 = vpop.permute.xlu1 %1027  ;;  %v1137_v15 = vcombine.low %v1133_v50, %v1134_v58 }
  0xfc   : > { %v1038_v29 = vmul.f32 %v1033_v0, %v1028_v1  ;;  %v1039_v10 = vmul.f32 %v1037_v17, %v1028_v1  ;;  %v1166_v0 = vrot.slane %v2010_v53, %v1768_v3  ;;  %v1170_v17 = vrot.slane %v2013_v62, %v1768_v3 }
  0xfd   : > { %v1025_v44 = vadd.f32 %v1023_v11, %v1006_v19  ;;  %v1180_v19 = vpop.permute.xlu0 %1179  ;;  %v1208_v3 = vrot.slane %v2013_v62, %v1741_v52 }
  0xfe   : > { %v1042_v13 = vcombine.low %v1038_v29, %v1039_v10  ;;  %v1190_v10 = vmul.f32 %v1185_v7, %v1180_v19  ;;  %v1191_v11 = vmul.f32 %v1189_v55, %v1180_v19 }
 0x100   : > { %v1047_v25 = vpop.permute.xlu1 %1046  ;;  %v1044_v18 = vadd.f32 %v1042_v13, %v1025_v44  ;;  %v1194_v30 = vcombine.low %v1190_v10, %v1191_v11 }
 0x101   : > { %v1057_v36 = vmul.f32 %v1052_v14, %v1047_v25  ;;  %v1058_v31 = vmul.f32 %v1056_v23, %v1047_v25  ;;  %v1204_v14 = vrot.slane %v2010_v53, %v1741_v52  ;;  %v1599_v23 = vmov 839922192   ;;  %v1237_v42 = vpop.permute.xlu0 %1236 }
 0x102   : > { %v1265_v24 = vunpack.c.l.s4 %v1599_v23  ;;  %v1223_v52 = vrot.slane %v2010_v53, %v1754_v56 }
 0x103   : > { %v1061_v33 = vcombine.low %v1057_v36, %v1058_v31  ;;  %v1242_v36 = vrot.slane %v2010_v53, %v1771_v4  ;;  %v1246_v31 = vrot.slane %v2013_v62, %v1771_v4 }
 0x104   : > { %v1266_v12 = vunpack.c.0.s8 %v1265_v24 }
 0x105   : > { %v1063_v35 = vadd.f32 %v1061_v33, %v1044_v18  ;;  %v1085_v45 = vpop.permute.xlu1 %1084  ;;  %v1227_v33 = vrot.slane %v2013_v62, %v1754_v56 }
 0x106   : > { %v1095_v48 = vmul.f32 %v1090_v26, %v1085_v45  ;;  %v1096_v39 = vmul.f32 %v1094_v34, %v1085_v45  ;;  %v1247_v34 = vmul.f32 %v1242_v36, %v1237_v42 }
 0x107   : > { %v1082_v57 = vadd.f32 %v1080_v47, %v1063_v35  ;;  %v1248_v35 = vmul.f32 %v1246_v31, %v1237_v42 }
 0x108   : > { %v1099_v40 = vcombine.low %v1095_v48, %v1096_v39  ;;  %v1269_v39 = vsub.s32 %v1266_v12, %v1715_v37 }
 0x109   : > { %v1251_v4 = vcombine.low %v1247_v34, %v1248_v35 }
 0x10a   : > { %v1104_v5 = vpop.permute.xlu1 %1103  ;;  %v1101_v59 = vadd.f32 %v1099_v40, %v1082_v57 }
 0x10b   : > { %v1114_v21 = vmul.f32 %v1109_v46, %v1104_v5  ;;  %v1115_v2 = vmul.f32 %v1113_v8, %v1104_v5 }
 0x10d   : > { %v1118_v6 = vcombine.low %v1114_v21, %v1115_v2 }
 0x10f   : > { %v1120_v49 = vadd.f32 %v1118_v6, %v1101_v59  ;;  %v1142_v60 = vpop.permute.xlu1 %1141 }
 0x110   : > { %v1152_v63 = vmul.f32 %v1147_v20, %v1142_v60  ;;  %v1153_v22 = vmul.f32 %v1151_v51, %v1142_v60 }
 0x111   : > { %v1139_v41 = vadd.f32 %v1137_v15, %v1120_v49 }
 0x112   : > { %v1156_v43 = vcombine.low %v1152_v63, %v1153_v22 }
 0x114   : > { %v1161_v1 = vpop.permute.xlu1 %1160  ;;  %v1158_v44 = vadd.f32 %v1156_v43, %v1139_v41 }
 0x115   : > { %v1171_v16 = vmul.f32 %v1166_v0, %v1161_v1  ;;  %v1172_v29 = vmul.f32 %v1170_v17, %v1161_v1 }
 0x117   : > { %v1175_v13 = vcombine.low %v1171_v16, %v1172_v29 }
 0x119   : > { %v1177_v61 = vadd.f32 %v1175_v13, %v1158_v44  ;;  %v1199_v38 = vpop.permute.xlu1 %1198 }
 0x11a   : > { %v1209_v25 = vmul.f32 %v1204_v14, %v1199_v38  ;;  %v1210_v28 = vmul.f32 %v1208_v3, %v1199_v38 }
 0x11b   : > { %v1196_v32 = vadd.f32 %v1194_v30, %v1177_v61 }
 0x11c   : > { %v1213_v18 = vcombine.low %v1209_v25, %v1210_v28 }
 0x11e   : > { %v1218_v26 = vpop.permute.xlu1 %1217  ;;  %v1215_v47 = vadd.f32 %v1213_v18, %v1196_v32 }
 0x11f   : > { %v1228_v45 = vmul.f32 %v1223_v52, %v1218_v26  ;;  %v1229_v48 = vmul.f32 %v1227_v33, %v1218_v26 }
 0x121   : > { %v1232_v54 = vcombine.low %v1228_v45, %v1229_v48 }
 0x123   : > { %v1234_v27 = vadd.f32 %v1232_v54, %v1215_v47  ;;  %v1263_v57 = vpop.permute.xlu1 %1262 }
 0x124   : > { %v1270_v40 = vrot.slane %v1263_v57, %v1269_v39 }
 0x125   : > { %v1253_v46 = vadd.f32 %v1251_v4, %v1234_v27 }
 0x127   : > { %v1272_v56 = vadd.f32 %v1270_v40, %v1253_v46 }
 0x129   : > { %1273 = vst [vmem:[%s330_s27] sm:$0xff] %v1272_v56 }
 0x12a PF: > { %s15_s20 = sadd.s32 1, %s1565_s20   ;;  %s2072_s18 = smov %s1561_s19 }
 0x12b   : > { %p12_p5 = scmp.ge.s32.totalorder %s15_s20, 4   ;;  %s2073_s19 = smov %s2075_s21 }
 0x12d   :  { %14 = sbr.rel (!%p12_p5) target bundleno = 2 (0x2), region = 87 }

</bundles_post_ra>
